<compile_context>
chip_gen: v6e
topology: v6e:2x2x1
jax: 0.10.0
libtpu: 0.0.40
codegen_flags: <defaults>
</compile_context>

<pallas_src>
import jax
import jax.numpy as jnp
from jax import lax
from jax.experimental import pallas as pl
from jax.experimental.pallas import tpu as pltpu

GAMMA = 0.98


def _pack_factor(d, h):
    """Timesteps packed per 128-lane row (keeps block-diagonal weights modest)."""
    if d >= 128 or 128 % d != 0:
        return 1          # graceful fallback: one timestep per row (still correct)
    p = 128 // d
    while p > 1 and p * h > 4096:   # cap P*H so kron'd weights stay small
        p //= 2
    return p


def _value_mlp_kernel(sp_ref, w1_ref, b1_ref, w2t_ref, out_ref):
    """V(s) = relu(s @ W1 + b1) @ W2 for one row tile, P timesteps per row.

    sp_ref:  (TILE_R, P*D)   f32  packed states (P timesteps per lane-dense row)
    w1_ref:  (P*D, P*H)      f32  block-diagonal kron(I_P, W1)
    b1_ref:  (1, P*H)        f32  b1 tiled P times
    w2t_ref: (P, P*H)        f32  kron(I_P, w2^T)
    out_ref: (1, P, TILE_R)  f32  out[0, p, r] = V(states[r*P + p])  (lane-dense)
    """
    # Layer 1 on the MXU (f32 accumulation); bias + ReLU on the VPU.
    h = jnp.dot(sp_ref[...], w1_ref[...], preferred_element_type=jnp.float32)
    h = jnp.maximum(h + b1_ref[...], 0.0)                        # (TILE_R, P*H)

    # Layer 2: contract the P*H axis of the W2 rows against h -> (P, TILE_R),
    # lane-dense along TILE_R (no N=1 matmul, no masked partial stores).
    v = lax.dot_general(
        w2t_ref[...], h,
        dimension_numbers=(((1,), (1,)), ((), ())),
        preferred_element_type=jnp.float32)                      # (P, TILE_R)
    out_ref[...] = v.reshape(out_ref.shape)


def advantage_network_returns(states, rewards, w1, b1, w2, b2, *,
                              gamma=GAMMA, tile_t=32768):
    """states: (T, D) f32; rewards: (T-1,) f32 -> (T-1,) f32 TD residuals."""
    T, D = states.shape
    H = w1.shape[1]
    assert T >= 2, "need at least one transition"

    P = _pack_factor(D, H)
    PD, PH = P * D, P * H

    # Re-view states with P timesteps per lane-dense row. Zero-copy (bitcast
    # reshape) when T % P == 0; otherwise one small pad pass for the ragged tail.
    T_pk = pl.cdiv(T, P) * P
    x = states if T_pk == T else jnp.pad(states, ((0, T_pk - T), (0, 0)))
    xp = x.reshape(T_pk // P, PD)
    R = T_pk // P                                       # packed rows

    # Row tile (in packed rows): multiple of 128 so the output slab stays lane
    # aligned; large enough (~0.5-2 MiB blocks) to hide the ~0.35us per-step
    # overhead; >= 2 grid steps when possible so v7x's two TCs both get work.
    if R <= 128:
        tile_r = R                                      # single (small) block
    else:
        tile_r = max(1, int(tile_t) // P // 128) * 128
        tile_r = max(128, min(tile_r, pl.cdiv(R, 128) * 128))
        if pl.cdiv(R, tile_r) < 2:
            tile_r = pl.cdiv(pl.cdiv(R, 2), 128) * 128  # force 2 tiles (v7x)
    num_tiles = pl.cdiv(R, tile_r)

    # Weight transforms: tiny (<= a few hundred KiB), trace-time only.
    f32 = jnp.float32
    w1_bd = jnp.kron(jnp.eye(P, dtype=f32), w1.astype(f32))               # (PD, PH)
    b1_t = jnp.tile(b1.astype(f32).reshape(-1), P).reshape(1, PH)         # (1, PH)
    w2_t = jnp.kron(jnp.eye(P, dtype=f32), w2.astype(f32).reshape(1, H))  # (P, PH)

    # VMEM per grid step (f32, double-buffered): input 2*tile_r*128*4 bytes,
    # output 2*P*tile_r*4, weights ~PD*PH*4 -> ~4.5 MiB at tile_r=4096;
    # comfortably inside the scoped VMEM on v5e/v6e/v7x.
    v_tiles = pl.pallas_call(
        _value_mlp_kernel,
        out_shape=jax.ShapeDtypeStruct((num_tiles, P, tile_r), f32),
        grid_spec=pltpu.PrefetchScalarGridSpec(
            num_scalar_prefetch=0,
            grid=(num_tiles,),
            in_specs=[
                pl.BlockSpec((tile_r, PD), lambda i: (i, 0)),   # streamed rows
                pl.BlockSpec((PD, PH), lambda i: (0, 0)),       # resident weights
                pl.BlockSpec((1, PH), lambda i: (0, 0)),
                pl.BlockSpec((P, PH), lambda i: (0, 0)),
            ],
            out_specs=pl.BlockSpec((1, P, tile_r), lambda i: (i, 0, 0)),
        ),
        compiler_params=pltpu.CompilerParams(
            dimension_semantics=("parallel",),         # independent row tiles
            vmem_limit_bytes=32 * 1024 * 1024,
        ),
    )(xp, w1_bd, b1_t, w2_t)

    # out[i, p, r] = V(states[(i*tile_r + r) * P + p]); restore timestep order.
    # Touches only ~4*T bytes and fuses with the epilogue below; padded / ragged
    # tail values land at flat indices >= T and are discarded by the slice.
    v_all = v_tiles.transpose(0, 2, 1).reshape(num_tiles * tile_r * P)[:T]
    v_all = v_all + b2.reshape(()).astype(f32)         # scalar bias folded here

    # TD residual / advantage: gamma * V(s_{t+1}) + r_t - V(s_t).
    # TODO(synk): optionally fuse this shift/combine into the kernel (per-tile
    # shifted outputs + boundary fixup) to shave the remaining ~15-20% traffic.
    return gamma * v_all[1:] + rewards.astype(f32) - v_all[:-1]


def _reference(states, rewards, w1, b1, w2, b2, gamma=GAMMA):
    h = jnp.maximum(jnp.dot(states, w1, precision="highest") + b1, 0.0)
    v_all = (jnp.dot(h, w2, precision="highest") + b2).reshape(-1)
    return gamma * v_all[1:] + rewards - v_all[:-1]


if __name__ == "__main__":
    key = jax.random.PRNGKey(0)
    k_s, k_r, k_w1, k_b1, k_w2, k_b2 = jax.random.split(key, 6)

    # Small shapes consistent with the module: d_state = 16, hidden = 32.
    T, D, H = 9, 16, 32
    states = jax.random.normal(k_s, (T, D), dtype=jnp.float32)
    rewards = jax.random.normal(k_r, (T - 1,), dtype=jnp.float32)

    w1 = jax.random.normal(k_w1, (D, H), dtype=jnp.float32) * 0.1
    b1 = jax.random.normal(k_b1, (H,), dtype=jnp.float32) * 0.1
    w2 = jax.random.normal(k_w2, (H, 1), dtype=jnp.float32) * 0.1
    b2 = jax.random.normal(k_b2, (1,), dtype=jnp.float32) * 0.1

    # Case 1: tiny trajectory (T = 9 -> 8 transitions), single small block.
    ref1 = _reference(states, rewards, w1, b1, w2, b2)
    out1 = jax.block_until_ready(
        advantage_network_returns(states, rewards, w1, b1, w2, b2))
    assert out1.shape == (T - 1,)
    assert jnp.allclose(out1, ref1, atol=1e-2, rtol=1e-2), (out1, ref1)

    # Case 2: longer trajectory, multi-tile grid with ragged last tile and a
    # ragged packed row (2500 % 8 != 0), small explicit tile -> 3 grid steps.
    T2 = 2500
    states2 = jax.random.normal(k_s, (T2, D), dtype=jnp.float32)
    rewards2 = jax.random.normal(k_r, (T2 - 1,), dtype=jnp.float32)
    ref2 = _reference(states2, rewards2, w1, b1, w2, b2)
    out2 = jax.block_until_ready(
        advantage_network_returns(states2, rewards2, w1, b1, w2, b2, tile_t=1024))
    assert out2.shape == (T2 - 1,)
    assert jnp.allclose(out2, ref2, atol=1e-2, rtol=1e-2), (out2, ref2)

    # Case 3: default tile_t exercises the ">= 2 tiles for v7x megacore" path.
    out3 = jax.block_until_ready(
        advantage_network_returns(states2, rewards2, w1, b1, w2, b2))
    assert out3.shape == (T2 - 1,)
    assert jnp.allclose(out3, ref2, atol=1e-2, rtol=1e-2), (out3, ref2)

    print("KERNEL_OK")
</pallas_src>

<mosaic_0001>
module attributes {stable_mosaic.version = 11 : i64} {
  func.func @_value_mlp_kernel(%arg0: i32, %arg1: memref<2x128xf32, #tpu.memory_space<vmem>>, %arg2: memref<128x256xf32, #tpu.memory_space<vmem>>, %arg3: memref<1x256xf32, #tpu.memory_space<vmem>>, %arg4: memref<8x256xf32, #tpu.memory_space<vmem>>, %arg5: memref<1x8x2xf32, #tpu.memory_space<vmem>>) attributes {dimension_semantics = [#tpu.dimension_semantics<parallel>], iteration_bounds = array<i64: 1>, scalar_prefetch = 0 : i64, scratch_operands = 0 : i64, tpu.core_type = #tpu.core_type<tc>, window_params = [{transform_indices = @transform_0, window_bounds = array<i64: 2, 128>}, {pipeline_mode = #tpu.pipeline_mode<synchronous>, transform_indices = @transform_1, window_bounds = array<i64: 128, 256>}, {pipeline_mode = #tpu.pipeline_mode<synchronous>, transform_indices = @transform_2, window_bounds = array<i64: 1, 256>}, {pipeline_mode = #tpu.pipeline_mode<synchronous>, transform_indices = @transform_3, window_bounds = array<i64: 8, 256>}, {transform_indices = @transform_4, window_bounds = array<i64: 1, 8, 2>}]} {
    %c0 = arith.constant 0 : index
    %c0_0 = arith.constant 0 : index
    %0 = vector.load %arg1[%c0, %c0_0] : memref<2x128xf32, #tpu.memory_space<vmem>>, vector<2x128xf32>
    %c0_1 = arith.constant 0 : index
    %c0_2 = arith.constant 0 : index
    %1 = vector.load %arg2[%c0_1, %c0_2] : memref<128x256xf32, #tpu.memory_space<vmem>>, vector<128x256xf32>
    %cst = arith.constant dense<0.000000e+00> : vector<2x256xf32>
    %2 = tpu.matmul %0, %1, %cst {dimension_numbers = #tpu.dot_dimension_numbers<[1], [0], [0], [1], [0, 0, 1, 1], [], []>} : vector<2x128xf32>, vector<128x256xf32>, vector<2x256xf32> -> vector<2x256xf32>
    %c0_3 = arith.constant 0 : index
    %c0_4 = arith.constant 0 : index
    %3 = vector.load %arg3[%c0_3, %c0_4] : memref<1x256xf32, #tpu.memory_space<vmem>>, vector<1x256xf32>
    %4 = vector.broadcast %3 : vector<1x256xf32> to vector<2x256xf32>
    %5 = arith.addf %2, %4 : vector<2x256xf32>
    %cst_5 = arith.constant 0.000000e+00 : f32
    %6 = vector.broadcast %cst_5 : f32 to vector<2x256xf32>
    %7 = arith.maximumf %5, %6 : vector<2x256xf32>
    %c0_6 = arith.constant 0 : index
    %c0_7 = arith.constant 0 : index
    %8 = vector.load %arg4[%c0_6, %c0_7] : memref<8x256xf32, #tpu.memory_space<vmem>>, vector<8x256xf32>
    %cst_8 = arith.constant dense<0.000000e+00> : vector<8x2xf32>
    %9 = tpu.matmul %8, %7, %cst_8 {dimension_numbers = #tpu.dot_dimension_numbers<[1], [1], [0], [0], [0, 0, 1, 0], [], []>} : vector<8x256xf32>, vector<2x256xf32>, vector<8x2xf32> -> vector<8x2xf32>
    %10 = vector.shape_cast %9 : vector<8x2xf32> to vector<1x8x2xf32>
    %c0_9 = arith.constant 0 : index
    %c0_10 = arith.constant 0 : index
    %c0_11 = arith.constant 0 : index
    %11 = vector.load %arg5[%c0_9, %c0_10, %c0_11] : memref<1x8x2xf32, #tpu.memory_space<vmem>>, vector<1x8x2xf32>
    tpu.vector_store %arg5[%c0_9, %c0_10, %c0_11], %10 {strides = array<i32>} : memref<1x8x2xf32, #tpu.memory_space<vmem>>, vector<1x8x2xf32>,
    return
  }
  func.func @transform_0(%arg0: i32) -> (i32, i32) {
    %c0_i32 = arith.constant 0 : i32
    %c0_i32_0 = arith.constant 0 : i32
    return %arg0, %c0_i32 : i32, i32
  }
  func.func @transform_1(%arg0: i32) -> (i32, i32) {
    %c0_i32 = arith.constant 0 : i32
    %c0_i32_0 = arith.constant 0 : i32
    %c0_i32_1 = arith.constant 0 : i32
    return %c0_i32, %c0_i32_0 : i32, i32
  }
  func.func @transform_2(%arg0: i32) -> (i32, i32) {
    %c0_i32 = arith.constant 0 : i32
    %c0_i32_0 = arith.constant 0 : i32
    %c0_i32_1 = arith.constant 0 : i32
    return %c0_i32, %c0_i32_0 : i32, i32
  }
  func.func @transform_3(%arg0: i32) -> (i32, i32) {
    %c0_i32 = arith.constant 0 : i32
    %c0_i32_0 = arith.constant 0 : i32
    %c0_i32_1 = arith.constant 0 : i32
    return %c0_i32, %c0_i32_0 : i32, i32
  }
  func.func @transform_4(%arg0: i32) -> (i32, i32, i32) {
    %c0_i32 = arith.constant 0 : i32
    %c0_i32_0 = arith.constant 0 : i32
    %c0_i32_1 = arith.constant 0 : i32
    return %arg0, %c0_i32, %c0_i32_0 : i32, i32, i32
  }
}

</mosaic_0001>

<bundles_post_ra>
// kernel: tpu_custom_call.1
= control target key start
LH: loop header
LB: loop body
LE: loop exit
PB: predicated region body
PF: predicated region fallthrough
CT: control target
= control target key end

     0   :  { %9 = vsyncpa [#allocation3], 0  ;;  %s368_s0 = inlined_call_operand.hbm [shape: f32[2,128], index: 0, kind: input, shape index: {}]   ;;  %s369_s1 = inlined_call_operand.hbm [shape: f32[128,256], index: 1, kind: input, shape index: {}]   ;;  %s370_s2 = inlined_call_operand.vmem [shape: f32[1,256], index: 2, kind: input, shape index: {}]   ;;  %s371_s3 = inlined_call_operand.hbm [shape: f32[8,256], index: 3, kind: input, shape index: {}]   ;;  %s372_s4 = inlined_call_operand.vmem [shape: f32[1,8,2], index: 4, kind: output, shape index: {}]  }
   0x1   :  { %10 = vsyncpa [#allocation5], 0  ;;  %s322_s15 = smov [#allocation4]  }
   0x2   :  { %s26_s16 = sshll.u32 %s322_s15, 4  ;;  %s27_s16 = int_to_ptr.vmem [resolvable:$true] %s26_s16 }
   0x3   :  { %s266_s17 = scalar_lea.vmem %s27_s16, 4096  ;;  %p271_p1 = scmp.lt.s32.totalorder %s27_s16, %s27_s16 }
   0x4   :  { %p267_p0 = scmp.ne.s32.totalorder %s27_s16, %s266_s17  ;;  %p272_p2 = scmp.lt.s32.totalorder %s266_s17, %s266_s17 }
   0x6   :  { %p273_p3 = por %p272_p2, %p271_p1 }
   0x8   :  { %p274_p4 = pnand %p273_p3, %p267_p0 }
   0xa   :  { %277 = shalt.err (!%p274_p4)
}
   0xb   :  { %s323_s18 = smov 256   ;;  %s324_s19 = smov 16  }
   0xc   :  { %32 = dma.hbm_to_vmem [thread:$0]  %s369_s1, 4096, %s27_s16, [#allocation5], %s323_s18, %s323_s18, %s324_s19  }
   0xd   :  { %s325_s22 = smov [#allocation2]   ;;  %s326_s24 = smov [#allocation6]  }
   0xe   :  { %s17_s23 = sshll.u32 %s325_s22, 4  ;;  %s41_s25 = sshll.u32 %s326_s24, 4  ;;  %s18_s23 = int_to_ptr.vmem [resolvable:$true] %s17_s23  ;;  %s42_s25 = int_to_ptr.vmem [resolvable:$true] %s41_s25 }
   0xf   :  { %s286_s26 = scalar_lea.vmem %s18_s23, 32  ;;  %p291_p6 = scmp.lt.s32.totalorder %s18_s23, %s18_s23 }
  0x10   :  { %p287_p5 = scmp.ne.s32.totalorder %s18_s23, %s286_s26  ;;  %p292_p7 = scmp.lt.s32.totalorder %s286_s26, %s286_s26 }
  0x12   :  { %p293_p8 = por %p292_p7, %p291_p6 }
  0x14   :  { %p294_p9 = pnand %p293_p8, %p287_p5 }
  0x16   :  { %297 = shalt.err (!%p294_p9)
}
  0x17   :  { %20 = dma.hbm_to_vmem [thread:$0]  %s368_s0, 32, %s18_s23, [#allocation3]  }
  0x18   :  { %s306_s29 = scalar_lea.vmem %s42_s25, 256  ;;  %p311_p11 = scmp.lt.s32.totalorder %s42_s25, %s42_s25 }
  0x19   :  { %p307_p10 = scmp.ne.s32.totalorder %s42_s25, %s306_s29  ;;  %p312_p12 = scmp.lt.s32.totalorder %s306_s29, %s306_s29 }
  0x1b   :  { %p313_p13 = por %p312_p12, %p311_p11 }
  0x1d   :  { %p314_p0 = pnand %p313_p13, %p307_p10 }
  0x1f   :  { %317 = shalt.err (!%p314_p0)
}
  0x20   :  { %44 = dma.hbm_to_vmem [thread:$0]  %s371_s3, 256, %s42_s25, [#allocation5]  }
  0x21   :  { %318 = dma.done.wait [#allocation3], 32  }
  0x22   :  { %319 = vsyncadd [#allocation3], 4294967264 }
  0x23   :  { %320 = dma.done.wait [#allocation5], 4352  }
  0x24   :  { %321 = vsyncadd [#allocation5], 4294962944  ;;  %v327_v0 = vmov 0.0   ;;  %v86_v1 = vld [vmem:[#allocation4 + $0xf8] sm:$0xff]  ;;  %v85_v2 = vld [vmem:[#allocation4 + $0xf0] sm:$0xff]  ;;  %v89_v35 = vlaneseq  ;;  %vm244_vm0 = vcmask 15360  }
  0x25   :  { %163 = vmatprep.mubr.f32.mxu0 %v327_v0  ;;  %v84_v3 = vld [vmem:[#allocation4 + $0xe8] sm:$0xff]  ;;  %99 = vmatprep.subr.mxu0 %v86_v1  ;;  %v83_v4 = vld [vmem:[#allocation4 + $0xe0] sm:$0xff]  ;;  %v82_v5 = vld [vmem:[#allocation4 + $0xd8] sm:$0xff] }
  0x26   :  { %100 = vmatpush1.msra.mxu0 %v85_v2  ;;  %v81_v6 = vld [vmem:[#allocation4 + $0xd0] sm:$0xff]  ;;  %v80_v7 = vld [vmem:[#allocation4 + $0xc8] sm:$0xff]  ;;  %v79_v8 = vld [vmem:[#allocation4 + $0xc0] sm:$0xff]  ;;  %v90_v36 = vshrl.u32 %v89_v35, 7 }
  0x27   :  { %101 = vmatprep.subr.mxu0 %v84_v3  ;;  %v78_v9 = vld [vmem:[#allocation4 + $0xb8] sm:$0xff]  ;;  %v77_v10 = vld [vmem:[#allocation4 + $0xb0] sm:$0xff]  ;;  %v76_v11 = vld [vmem:[#allocation4 + $0xa8] sm:$0xff] }
  0x28   :  { %102 = vmatpush1.msra.mxu0 %v83_v4  ;;  %v75_v12 = vld [vmem:[#allocation4 + $0xa0] sm:$0xff]  ;;  %v74_v13 = vld [vmem:[#allocation4 + $0x98] sm:$0xff]  ;;  %v73_v14 = vld [vmem:[#allocation4 + $0x90] sm:$0xff]  ;;  %v91_v37 = vsub.s32 0, %v90_v36  ;;  %v95_v39 = vsub.s32 1, %v90_v36 }
  0x29   :  { %103 = vmatprep.subr.mxu0 %v82_v5  ;;  %v72_v15 = vld [vmem:[#allocation4 + $0x88] sm:$0xff]  ;;  %v71_v16 = vld [vmem:[#allocation4 + $0x80] sm:$0xff]  ;;  %v70_v17 = vld [vmem:[#allocation4 + $0x78] sm:$0xff] }
  0x2a   :  { %104 = vmatpush1.msra.mxu0 %v81_v6  ;;  %v69_v18 = vld [vmem:[#allocation4 + $0x70] sm:$0xff]  ;;  %v68_v19 = vld [vmem:[#allocation4 + $0x68] sm:$0xff]  ;;  %v67_v20 = vld [vmem:[#allocation4 + $0x60] sm:$0xff] }
  0x2b   :  { %105 = vmatprep.subr.mxu0 %v80_v7  ;;  %v66_v21 = vld [vmem:[#allocation4 + $0x58] sm:$0xff]  ;;  %v65_v22 = vld [vmem:[#allocation4 + $0x50] sm:$0xff]  ;;  %v64_v23 = vld [vmem:[#allocation4 + $0x48] sm:$0xff] }
  0x2c   :  { %106 = vmatpush1.msra.mxu0 %v79_v8  ;;  %v63_v24 = vld [vmem:[#allocation4 + $0x40] sm:$0xff]  ;;  %v62_v25 = vld [vmem:[#allocation4 + $0x38] sm:$0xff]  ;;  %v61_v26 = vld [vmem:[#allocation4 + $0x30] sm:$0xff] }
  0x2d   :  { %107 = vmatprep.subr.mxu0 %v78_v9  ;;  %v60_v27 = vld [vmem:[#allocation4 + $0x28] sm:$0xff]  ;;  %v59_v28 = vld [vmem:[#allocation4 + $0x20] sm:$0xff]  ;;  %v58_v29 = vld [vmem:[#allocation4 + $0x18] sm:$0xff] }
  0x2e   :  { %108 = vmatpush1.msra.mxu0 %v77_v10  ;;  %v57_v30 = vld [vmem:[#allocation4 + $0x10] sm:$0xff]  ;;  %v56_v31 = vld [vmem:[#allocation4 + $0x8] sm:$0xff]  ;;  %v55_v32 = vld [vmem:[#allocation4] sm:$0xff] }
  0x2f   :  { %109 = vmatprep.subr.mxu0 %v76_v11  ;;  %v54_v33 = vld [vmem:[#allocation2] sm:$0x3]  ;;  %v173_v34 = vld [vmem:[#allocation6 + $0x8] sm:$0xff]  ;;  %v172_v48 = vld [vmem:[#allocation6] sm:$0xff] }
  0x30   :  { %110 = vmatpush1.msra.mxu0 %v75_v12  ;;  %238 = vmatprep.mubr.f32.mxu1 %v173_v34  ;;  %v87_v38 = vld [vmem:[%s370_s2] sm:$0x3] }
  0x31   :  { %111 = vmatprep.subr.mxu0 %v74_v13  ;;  %v92_v40 = vrot.slane %v87_v38, %v91_v37  ;;  %v96_v41 = vrot.slane %v87_v38, %v95_v39 }
  0x32   :  { %112 = vmatpush1.msra.mxu0 %v73_v14 }
  0x33   :  { %113 = vmatprep.subr.mxu0 %v72_v15 }
  0x34   :  { %114 = vmatpush1.msra.mxu0 %v71_v16 }
  0x35   :  { %115 = vmatprep.subr.mxu0 %v70_v17 }
  0x36   :  { %116 = vmatpush1.msra.mxu0 %v69_v18 }
  0x37   :  { %117 = vmatprep.subr.mxu0 %v68_v19 }
  0x38   :  { %118 = vmatpush1.msra.mxu0 %v67_v20 }
  0x39   :  { %119 = vmatprep.subr.mxu0 %v66_v21 }
  0x3a   :  { %120 = vmatpush1.msra.mxu0 %v65_v22 }
  0x3b   :  { %121 = vmatprep.subr.mxu0 %v64_v23 }
  0x3c   :  { %122 = vmatpush1.msra.mxu0 %v63_v24 }
  0x3d   :  { %123 = vmatprep.subr.mxu0 %v62_v25 }
  0x3e   :  { %124 = vmatpush1.msra.mxu0 %v61_v26 }
  0x3f   :  { %125 = vmatprep.subr.mxu0 %v60_v27 }
  0x40   :  { %126 = vmatpush1.msra.mxu0 %v59_v28 }
  0x41   :  { %127 = vmatprep.subr.mxu0 %v58_v29 }
  0x42   :  { %128 = vmatpush1.msra.mxu0 %v57_v30 }
  0x43   :  { %129 = vmatprep.subr.mxu0 %v56_v31 }
  0x44   :  { %130 = vmatpush1.msra.mxu0 %v55_v32 }
  0x45   :  { %164 = vmatmul.mubr.f32.vlgmr.msra.gmra.mxu0 %v54_v33 }
 0x105   :  { %v165_v42 = vpop.f32.mrf.mxu0 }
 0x106   :  { %v166_v43 = vadd.f32 %v165_v42, %v92_v40 }
 0x107   :  { %v167_v44 = vpop.f32.mrf.mxu0 }
 0x108   :  { %v168_v45 = vadd.f32 %v167_v44, %v96_v41  ;;  %v170_v47 = vmax.f32 %v166_v43, 0.0 }
 0x10a   :  { %v171_v46 = vmax.f32 %v168_v45, 0.0 }
 0x10c   :  { %204 = vmatprep.subr.mxu1 %v171_v46 }
 0x10d   :  { %205 = vmatpush1.xpose.msra.mxu1 %v170_v47 }
 0x110   :  { %239 = vmatmul.mubr.f32.vlgmr.msra.gmra.mxu1 %v172_v48 }
 0x1d0   :  { %v240_v49 = vpop.f32.mrf.mxu1 }
 0x1d1   :  { %245 = vst.msk [vmem:[%s372_s4] sm:$0xff] %vm244_vm0, %v240_v49 }
 0x1d2   :  { %v242_v50 = vpop.f32.mrf.mxu1 }
 0x1d3   :  { %250 = vsyncpa [#allocation3], 1 }
 0x1d4   :  { %251 = vsyncpa [#allocation5], 1 }

</bundles_post_ra>
